<compile_context>
chip_gen: v6e
topology: v6e:2x2x1
jax: 0.10.0
libtpu: 0.0.40
codegen_flags: <defaults>
</compile_context>

<pallas_src>
import functools

import jax
import jax.numpy as jnp
from jax.experimental import pallas as pl
from jax.experimental.pallas import tpu as pltpu

LANE = 128      # lane width of a vreg (last dim)
SUBLANE = 8     # sublane width of a vreg (second-to-last dim, f32)


def _round_up(n, m):
    return ((n + m - 1) // m) * m


def _pad2(a, rows, cols, dtype):
    r, c = a.shape
    return jnp.pad(a, ((0, rows - r), (0, cols - c))).astype(dtype)


def dqn1_kernel(x_ref, w1_ref, b1_ref, w2_ref, b2_ref, w3_ref, b3_ref, o_ref):
    # x / w* are bf16 (MXU-native); accumulate in f32, bias+tanh in f32 on VPU/EUP.
    x = x_ref[...]
    h1 = jnp.tanh(
        jnp.dot(x, w1_ref[...], preferred_element_type=jnp.float32) + b1_ref[...]
    ).astype(w2_ref.dtype)
    h2 = jnp.tanh(
        jnp.dot(h1, w2_ref[...], preferred_element_type=jnp.float32) + b2_ref[...]
    ).astype(w3_ref.dtype)
    # layer3 (no activation); output block is lane-dense (padded to 128 cols).
    o_ref[...] = (
        jnp.dot(h2, w3_ref[...], preferred_element_type=jnp.float32) + b3_ref[...]
    ).astype(o_ref.dtype)
    # TODO(synk): for the acting path, a fused argmax over the n_actions columns could
    # be emitted as a second [TB, 1] int32 output to avoid a narrow HBM readback.


def prepare_params(params, compute_dtype=jnp.bfloat16):
    """Pad weights/biases to lane-aligned shapes and cast weights to bf16. Do this ONCE
    (e.g. after every optimizer step), not per forward call."""
    w1, b1, w2, b2, w3, b3 = (
        params["w1"], params["b1"], params["w2"],
        params["b2"], params["w3"], params["b3"],
    )
    n_obs, hidden = w1.shape
    n_actions = w3.shape[1]
    d_in = _round_up(n_obs, LANE)
    d_h = _round_up(hidden, LANE)
    d_out = _round_up(n_actions, LANE)
    padded = {
        "w1": _pad2(w1, d_in, d_h, compute_dtype),
        "b1": _pad2(b1, 1, d_h, jnp.float32),
        "w2": _pad2(w2, d_h, d_h, compute_dtype),
        "b2": _pad2(b2, 1, d_h, jnp.float32),
        "w3": _pad2(w3, d_h, d_out, compute_dtype),
        "b3": _pad2(b3, 1, d_out, jnp.float32),
    }
    meta = {"n_obs": n_obs, "hidden": hidden, "n_actions": n_actions}
    return padded, meta


@functools.partial(jax.jit, static_argnames=("n_actions", "batch_tile", "compute_dtype"))
def dqn1_forward(x, padded, *, n_actions, batch_tile=512, compute_dtype=jnp.bfloat16):
    """x: [B, n_observations] float32. `padded` from prepare_params()."""
    B, n_obs = x.shape
    d_in = padded["w1"].shape[0]
    d_out = padded["w3"].shape[1]

    # Batch tiling: TB rows per grid step (sublane-aligned); pad B up to a multiple of TB.
    tb = min(_round_up(batch_tile, SUBLANE), _round_up(B, SUBLANE))
    b_pad = _round_up(B, tb)
    grid = (b_pad // tb,)

    # Per-call prep: only pad/cast the activations (fuses under jit).
    xp = _pad2(x, b_pad, d_in, compute_dtype)

    d_h = padded["w2"].shape[0]
    flops = 2 * b_pad * (d_in * d_h + d_h * d_h + d_h * d_out)
    transcendentals = 2 * b_pad * d_h  # two tanh layers
    bytes_accessed = (
        xp.size * 2
        + sum(p.size * p.dtype.itemsize for p in padded.values())
        + b_pad * d_out * 4
    )

    # Parameters: constant index_map -> loaded once, stay VMEM-resident across grid steps.
    const = lambda shape: pl.BlockSpec(shape, lambda i: (0, 0))

    out = pl.pallas_call(
        dqn1_kernel,
        out_shape=jax.ShapeDtypeStruct((b_pad, d_out), jnp.float32),
        grid=grid,
        in_specs=[
            pl.BlockSpec((tb, d_in), lambda i: (i, 0)),   # x streams per batch tile
            const(padded["w1"].shape), const(padded["b1"].shape),
            const(padded["w2"].shape), const(padded["b2"].shape),
            const(padded["w3"].shape), const(padded["b3"].shape),
        ],
        out_specs=pl.BlockSpec((tb, d_out), lambda i: (i, 0)),
        compiler_params=pltpu.CompilerParams(
            dimension_semantics=("parallel",),            # shard batch tiles across TCs (v7x)
        ),
        cost_estimate=pl.CostEstimate(
            flops=flops, transcendentals=transcendentals, bytes_accessed=bytes_accessed
        ),
    )(xp, padded["w1"], padded["b1"], padded["w2"], padded["b2"],
      padded["w3"], padded["b3"])

    return out[:B, :n_actions]


def init_params(key, num_nodes, n_observations, n_actions):
    """Deterministic init mimicking nn.Linear's U(-1/sqrt(fan_in), 1/sqrt(fan_in)).
    Weights stored transposed vs. PyTorch: [in_features, out_features]; biases [1, out]."""
    ks = jax.random.split(key, 6)

    def linear(kw, kb, fan_in, fan_out):
        bound = 1.0 / jnp.sqrt(jnp.float32(fan_in))
        w = jax.random.uniform(kw, (fan_in, fan_out), jnp.float32, -bound, bound)
        b = jax.random.uniform(kb, (1, fan_out), jnp.float32, -bound, bound)
        return w, b

    w1, b1 = linear(ks[0], ks[1], n_observations, num_nodes)
    w2, b2 = linear(ks[2], ks[3], num_nodes, num_nodes)
    w3, b3 = linear(ks[4], ks[5], num_nodes, n_actions)
    return {"w1": w1, "b1": b1, "w2": w2, "b2": b2, "w3": w3, "b3": b3}


def _reference(x, params):
    h = jnp.tanh(x @ params["w1"] + params["b1"])
    h = jnp.tanh(h @ params["w2"] + params["b2"])
    return h @ params["w3"] + params["b3"]


if __name__ == "__main__":
    # Pendulum-ish sizes: 3 observations (cos, sin, theta_dot), discretized actions.
    num_nodes, n_observations, n_actions = 32, 3, 5

    key = jax.random.PRNGKey(0)
    k_x, k_x2, k_p = jax.random.split(key, 3)
    params = init_params(k_p, num_nodes, n_observations, n_actions)

    # One-time padded/bf16 parameter prep (outside the hot path).
    padded, meta = prepare_params(params)

    # Small "acting" batch (single grid step).
    B = 2
    x = jax.random.normal(k_x, (B, n_observations), jnp.float32)
    out = jax.block_until_ready(dqn1_forward(x, padded, n_actions=meta["n_actions"]))
    ref = _reference(x, params)
    assert out.shape == (B, n_actions)
    assert jnp.allclose(out, ref, atol=2e-2, rtol=2e-2), "mismatch vs reference (B=2)"

    # Larger "training" batch exercising the batch grid (multiple tiles).
    B2 = 1024
    x2 = jax.random.normal(k_x2, (B2, n_observations), jnp.float32)
    out2 = jax.block_until_ready(
        dqn1_forward(x2, padded, n_actions=meta["n_actions"], batch_tile=512)
    )
    ref2 = _reference(x2, params)
    assert out2.shape == (B2, n_actions)
    assert jnp.allclose(out2, ref2, atol=2e-2, rtol=2e-2), "mismatch vs reference (B=1024)"

    print("KERNEL_OK")
</pallas_src>

<mosaic_0001>
module attributes {stable_mosaic.version = 11 : i64} {
  func.func @dqn1_kernel(%arg0: i32, %arg1: memref<8x128xbf16, #tpu.memory_space<vmem>>, %arg2: memref<128x128xbf16, #tpu.memory_space<vmem>>, %arg3: memref<1x128xf32, #tpu.memory_space<vmem>>, %arg4: memref<128x128xbf16, #tpu.memory_space<vmem>>, %arg5: memref<1x128xf32, #tpu.memory_space<vmem>>, %arg6: memref<128x128xbf16, #tpu.memory_space<vmem>>, %arg7: memref<1x128xf32, #tpu.memory_space<vmem>>, %arg8: memref<8x128xf32, #tpu.memory_space<vmem>>) attributes {dimension_semantics = [#tpu.dimension_semantics<parallel>], iteration_bounds = array<i64: 1>, scalar_prefetch = 0 : i64, scratch_operands = 0 : i64, tpu.core_type = #tpu.core_type<tc>, window_params = [{transform_indices = @transform_0, window_bounds = array<i64: 8, 128>}, {pipeline_mode = #tpu.pipeline_mode<synchronous>, transform_indices = @transform_1, window_bounds = array<i64: 128, 128>}, {pipeline_mode = #tpu.pipeline_mode<synchronous>, transform_indices = @transform_2, window_bounds = array<i64: 1, 128>}, {pipeline_mode = #tpu.pipeline_mode<synchronous>, transform_indices = @transform_3, window_bounds = array<i64: 128, 128>}, {pipeline_mode = #tpu.pipeline_mode<synchronous>, transform_indices = @transform_4, window_bounds = array<i64: 1, 128>}, {pipeline_mode = #tpu.pipeline_mode<synchronous>, transform_indices = @transform_5, window_bounds = array<i64: 128, 128>}, {pipeline_mode = #tpu.pipeline_mode<synchronous>, transform_indices = @transform_6, window_bounds = array<i64: 1, 128>}, {transform_indices = @transform_7, window_bounds = array<i64: 8, 128>}]} {
    %c0 = arith.constant 0 : index
    %c0_0 = arith.constant 0 : index
    %0 = vector.load %arg1[%c0, %c0_0] : memref<8x128xbf16, #tpu.memory_space<vmem>>, vector<8x128xbf16>
    %c0_1 = arith.constant 0 : index
    %c0_2 = arith.constant 0 : index
    %1 = vector.load %arg2[%c0_1, %c0_2] : memref<128x128xbf16, #tpu.memory_space<vmem>>, vector<128x128xbf16>
    %cst = arith.constant dense<0.000000e+00> : vector<8x128xf32>
    %2 = tpu.matmul %0, %1, %cst {dimension_numbers = #tpu.dot_dimension_numbers<[1], [0], [0], [1], [0, 0, 1, 1], [], []>} : vector<8x128xbf16>, vector<128x128xbf16>, vector<8x128xf32> -> vector<8x128xf32>
    %c0_3 = arith.constant 0 : index
    %c0_4 = arith.constant 0 : index
    %3 = vector.load %arg3[%c0_3, %c0_4] : memref<1x128xf32, #tpu.memory_space<vmem>>, vector<1x128xf32>
    %4 = vector.broadcast %3 : vector<1x128xf32> to vector<8x128xf32>
    %5 = arith.addf %2, %4 : vector<8x128xf32>
    %6 = math.tanh %5 : vector<8x128xf32>
    %7 = arith.truncf %6 : vector<8x128xf32> to vector<8x128xbf16>
    %c0_5 = arith.constant 0 : index
    %c0_6 = arith.constant 0 : index
    %8 = vector.load %arg4[%c0_5, %c0_6] : memref<128x128xbf16, #tpu.memory_space<vmem>>, vector<128x128xbf16>
    %cst_7 = arith.constant dense<0.000000e+00> : vector<8x128xf32>
    %9 = tpu.matmul %7, %8, %cst_7 {dimension_numbers = #tpu.dot_dimension_numbers<[1], [0], [0], [1], [0, 0, 1, 1], [], []>} : vector<8x128xbf16>, vector<128x128xbf16>, vector<8x128xf32> -> vector<8x128xf32>
    %c0_8 = arith.constant 0 : index
    %c0_9 = arith.constant 0 : index
    %10 = vector.load %arg5[%c0_8, %c0_9] : memref<1x128xf32, #tpu.memory_space<vmem>>, vector<1x128xf32>
    %11 = vector.broadcast %10 : vector<1x128xf32> to vector<8x128xf32>
    %12 = arith.addf %9, %11 : vector<8x128xf32>
    %13 = math.tanh %12 : vector<8x128xf32>
    %14 = arith.truncf %13 : vector<8x128xf32> to vector<8x128xbf16>
    %c0_10 = arith.constant 0 : index
    %c0_11 = arith.constant 0 : index
    %15 = vector.load %arg6[%c0_10, %c0_11] : memref<128x128xbf16, #tpu.memory_space<vmem>>, vector<128x128xbf16>
    %cst_12 = arith.constant dense<0.000000e+00> : vector<8x128xf32>
    %16 = tpu.matmul %14, %15, %cst_12 {dimension_numbers = #tpu.dot_dimension_numbers<[1], [0], [0], [1], [0, 0, 1, 1], [], []>} : vector<8x128xbf16>, vector<128x128xbf16>, vector<8x128xf32> -> vector<8x128xf32>
    %c0_13 = arith.constant 0 : index
    %c0_14 = arith.constant 0 : index
    %17 = vector.load %arg7[%c0_13, %c0_14] : memref<1x128xf32, #tpu.memory_space<vmem>>, vector<1x128xf32>
    %18 = vector.broadcast %17 : vector<1x128xf32> to vector<8x128xf32>
    %19 = arith.addf %16, %18 : vector<8x128xf32>
    %c0_15 = arith.constant 0 : index
    %c0_16 = arith.constant 0 : index
    %20 = vector.load %arg8[%c0_15, %c0_16] : memref<8x128xf32, #tpu.memory_space<vmem>>, vector<8x128xf32>
    tpu.vector_store %arg8[%c0_15, %c0_16], %19 {strides = array<i32>} : memref<8x128xf32, #tpu.memory_space<vmem>>, vector<8x128xf32>,
    return
  }
  func.func @transform_0(%arg0: i32) -> (i32, i32) {
    %c0_i32 = arith.constant 0 : i32
    %c0_i32_0 = arith.constant 0 : i32
    return %arg0, %c0_i32 : i32, i32
  }
  func.func @transform_1(%arg0: i32) -> (i32, i32) {
    %c0_i32 = arith.constant 0 : i32
    %c0_i32_0 = arith.constant 0 : i32
    %c0_i32_1 = arith.constant 0 : i32
    return %c0_i32, %c0_i32_0 : i32, i32
  }
  func.func @transform_2(%arg0: i32) -> (i32, i32) {
    %c0_i32 = arith.constant 0 : i32
    %c0_i32_0 = arith.constant 0 : i32
    %c0_i32_1 = arith.constant 0 : i32
    return %c0_i32, %c0_i32_0 : i32, i32
  }
  func.func @transform_3(%arg0: i32) -> (i32, i32) {
    %c0_i32 = arith.constant 0 : i32
    %c0_i32_0 = arith.constant 0 : i32
    %c0_i32_1 = arith.constant 0 : i32
    return %c0_i32, %c0_i32_0 : i32, i32
  }
  func.func @transform_4(%arg0: i32) -> (i32, i32) {
    %c0_i32 = arith.constant 0 : i32
    %c0_i32_0 = arith.constant 0 : i32
    %c0_i32_1 = arith.constant 0 : i32
    return %c0_i32, %c0_i32_0 : i32, i32
  }
  func.func @transform_5(%arg0: i32) -> (i32, i32) {
    %c0_i32 = arith.constant 0 : i32
    %c0_i32_0 = arith.constant 0 : i32
    %c0_i32_1 = arith.constant 0 : i32
    return %c0_i32, %c0_i32_0 : i32, i32
  }
  func.func @transform_6(%arg0: i32) -> (i32, i32) {
    %c0_i32 = arith.constant 0 : i32
    %c0_i32_0 = arith.constant 0 : i32
    %c0_i32_1 = arith.constant 0 : i32
    return %c0_i32, %c0_i32_0 : i32, i32
  }
  func.func @transform_7(%arg0: i32) -> (i32, i32) {
    %c0_i32 = arith.constant 0 : i32
    %c0_i32_0 = arith.constant 0 : i32
    return %arg0, %c0_i32 : i32, i32
  }
}

</mosaic_0001>

<bundles_post_ra>
// kernel: dqn1_forward.1
= control target key start
LH: loop header
LB: loop body
LE: loop exit
PB: predicated region body
PF: predicated region fallthrough
CT: control target
= control target key end

     0   :  { %12 = vsyncpa [#allocation3], 0  ;;  %s727_s0 = inlined_call_operand.vmem [shape: bf16[8,128], index: 0, kind: input, shape index: {}]   ;;  %s728_s1 = inlined_call_operand.hbm [shape: bf16[128,128], index: 1, kind: input, shape index: {}]   ;;  %s729_s2 = inlined_call_operand.vmem [shape: f32[1,128], index: 2, kind: input, shape index: {}]   ;;  %s730_s3 = inlined_call_operand.hbm [shape: bf16[128,128], index: 3, kind: input, shape index: {}]   ;;  %s731_s4 = inlined_call_operand.vmem [shape: f32[1,128], index: 4, kind: input, shape index: {}]   ;;  %s732_s5 = inlined_call_operand.hbm [shape: bf16[128,128], index: 5, kind: input, shape index: {}]   ;;  %s733_s6 = inlined_call_operand.vmem [shape: f32[1,128], index: 6, kind: input, shape index: {}]   ;;  %s734_s7 = inlined_call_operand.vmem [shape: f32[8,128], index: 7, kind: output, shape index: {}]  }
   0x1   :  { %13 = vsyncpa [#allocation5], 0  ;;  %s626_s24 = smov [#allocation4]   ;;  %s627_s26 = smov [#allocation2]  }
   0x2   :  { %s35_s25 = sshll.u32 %s626_s24, 4  ;;  %s21_s27 = sshll.u32 %s627_s26, 4  ;;  %s36_s25 = int_to_ptr.vmem [resolvable:$true] %s35_s25  ;;  %s22_s27 = int_to_ptr.vmem [resolvable:$true] %s21_s27 }
   0x3   :  { %s570_s28 = scalar_lea.vmem %s36_s25, 1024  ;;  %p575_p1 = scmp.lt.s32.totalorder %s36_s25, %s36_s25 }
   0x4   :  { %p571_p0 = scmp.ne.s32.totalorder %s36_s25, %s570_s28  ;;  %p576_p2 = scmp.lt.s32.totalorder %s570_s28, %s570_s28 }
   0x6   :  { %p577_p3 = por %p576_p2, %p575_p1 }
   0x8   :  { %p578_p4 = pnand %p577_p3, %p571_p0 }
   0xa   :  { %581 = shalt.err (!%p578_p4)
}
   0xb   :  { %s628_s29 = smov 64   ;;  %s629_s30 = smov 4  }
   0xc   :  { %41 = dma.hbm_to_vmem [thread:$0]  %s730_s3, 1024, %s36_s25, [#allocation5], %s628_s29, %s628_s29, %s629_s30  }
   0xd   :  { %s590_s10 = scalar_lea.vmem %s22_s27, 1024  ;;  %p595_p6 = scmp.lt.s32.totalorder %s22_s27, %s22_s27 }
   0xe   :  { %p591_p5 = scmp.ne.s32.totalorder %s22_s27, %s590_s10  ;;  %p596_p7 = scmp.lt.s32.totalorder %s590_s10, %s590_s10 }
  0x10   :  { %p597_p8 = por %p596_p7, %p595_p6 }
  0x12   :  { %p598_p9 = pnand %p597_p8, %p591_p5 }
  0x14   :  { %601 = shalt.err (!%p598_p9)
}
  0x15   :  { %27 = dma.hbm_to_vmem [thread:$0]  %s728_s1, 1024, %s22_s27, [#allocation3], %s628_s29, %s628_s29, %s629_s30  }
  0x16   :  { %s630_s13 = smov [#allocation6]  }
  0x17   :  { %s49_s14 = sshll.u32 %s630_s13, 4  ;;  %s50_s14 = int_to_ptr.vmem [resolvable:$true] %s49_s14 }
  0x18   :  { %s610_s15 = scalar_lea.vmem %s50_s14, 1024  ;;  %p615_p11 = scmp.lt.s32.totalorder %s50_s14, %s50_s14 }
  0x19   :  { %p611_p10 = scmp.ne.s32.totalorder %s50_s14, %s610_s15  ;;  %p616_p12 = scmp.lt.s32.totalorder %s610_s15, %s610_s15 }
  0x1b   :  { %p617_p13 = por %p616_p12, %p615_p11 }
  0x1d   :  { %p618_p0 = pnand %p617_p13, %p611_p10 }
  0x1f   :  { %621 = shalt.err (!%p618_p0)
}
  0x20   :  { %55 = dma.hbm_to_vmem [thread:$0]  %s732_s5, 1024, %s50_s14, [#allocation5], %s628_s29, %s628_s29, %s629_s30  }
  0x21   :  { %622 = dma.done.wait [#allocation3], 1024  }
  0x22   :  { %623 = vsyncadd [#allocation3], 4294966272 }
  0x23   :  { %624 = dma.done.wait [#allocation5], 2048  }
  0x24   :  { %625 = vsyncadd [#allocation5], 4294965248  ;;  %v631_v0 = vmov 0.0   ;;  %vm632_vm0 = vmmov 0   ;;  %v534_v1 = vld [vmem:[#allocation2 + $0x38] sm:$0xff]   ;;  %v535_v2 = vld [vmem:[#allocation2 + $0x30] sm:$0xff]  }
  0x25   :  { %467 = vmatprep.subr.bf16.mxu0 %v631_v0  ;;  %483 = vmatprep.mubr.msk.bf16.mxu0 %vm632_vm0, %v631_v0  ;;  %v536_v3 = vld [vmem:[#allocation2 + $0x28] sm:$0xff]   ;;  %v542_v4 = vld [vmem:[#allocation4 + $0x38] sm:$0xff]   ;;  %v537_v5 = vld [vmem:[#allocation2 + $0x20] sm:$0xff]  }
  0x26   :  { %487 = vmatprep.subr.bf16.mxu1 %v631_v0  ;;  %503 = vmatprep.mubr.msk.bf16.mxu1 %vm632_vm0, %v631_v0  ;;  %v543_v6 = vld [vmem:[#allocation4 + $0x30] sm:$0xff]   ;;  %v538_v7 = vld [vmem:[#allocation2 + $0x18] sm:$0xff]   ;;  %v544_v8 = vld [vmem:[#allocation4 + $0x28] sm:$0xff]  }
  0x27   :  { %468 = vmatpush3.bf16.msra.mxu0 %v534_v1  ;;  %488 = vmatpush3.bf16.msra.mxu1 %v542_v4  ;;  %v539_v9 = vld [vmem:[#allocation2 + $0x10] sm:$0xff]   ;;  %v540_v10 = vld [vmem:[#allocation2 + $0x8] sm:$0xff]   ;;  %v541_v11 = vld [vmem:[#allocation2] sm:$0xff]  }
  0x28   :  { %469 = vmatprep.subr.bf16.mxu0 %v631_v0  ;;  %489 = vmatprep.subr.bf16.mxu1 %v631_v0  ;;  %v68_v12 = vld [vmem:[%s727_s0] sm:$0xf]  ;;  %v546_v14 = vld [vmem:[#allocation4 + $0x18] sm:$0xff]   ;;  %v547_v15 = vld [vmem:[#allocation4 + $0x10] sm:$0xff]  }
  0x29   :  { %v545_v13 = vld [vmem:[#allocation4 + $0x20] sm:$0xff]   ;;  %v548_v16 = vld [vmem:[#allocation4 + $0x8] sm:$0xff]   ;;  %v550_v18 = vld [vmem:[#allocation6 + $0x38] sm:$0xff]  }
  0x2a   :  { %v549_v17 = vld [vmem:[#allocation4] sm:$0xff]   ;;  %v551_v19 = vld [vmem:[#allocation6 + $0x30] sm:$0xff]   ;;  %v552_v20 = vld [vmem:[#allocation6 + $0x28] sm:$0xff]  }
  0x2b   :  { %470 = vmatpush3.bf16.msra.mxu0 %v535_v2  ;;  %490 = vmatpush3.bf16.msra.mxu1 %v543_v6  ;;  %v413_v21 = vld [vmem:[%s729_s2] ss:$0 sm:$0xff]  ;;  %v554_v30 = vld [vmem:[#allocation6 + $0x18] sm:$0xff]   ;;  %v555_v31 = vld [vmem:[#allocation6 + $0x10] sm:$0xff]  }
  0x2c   :  { %471 = vmatprep.subr.bf16.mxu0 %v631_v0  ;;  %491 = vmatprep.subr.bf16.mxu1 %v631_v0  ;;  %v553_v29 = vld [vmem:[#allocation6 + $0x20] sm:$0xff]   ;;  %v556_v32 = vld [vmem:[#allocation6 + $0x8] sm:$0xff]  }
  0x2d   :  { %v557_v33 = vld [vmem:[#allocation6] sm:$0xff]  }
  0x2e   :  { %v422_v34 = vld [vmem:[%s731_s4] ss:$0 sm:$0xff] }
  0x2f   :  { %472 = vmatpush3.bf16.msra.mxu0 %v536_v3  ;;  %492 = vmatpush3.bf16.msra.mxu1 %v544_v8  ;;  %v431_v42 = vld [vmem:[%s733_s6] ss:$0 sm:$0xff] }
  0x30   :  { %473 = vmatprep.subr.bf16.mxu0 %v631_v0  ;;  %493 = vmatprep.subr.bf16.mxu1 %v631_v0 }
  0x33   :  { %474 = vmatpush3.bf16.msra.mxu0 %v537_v5  ;;  %494 = vmatpush3.bf16.msra.mxu1 %v545_v13 }
  0x34   :  { %475 = vmatprep.subr.bf16.mxu0 %v631_v0  ;;  %495 = vmatprep.subr.bf16.mxu1 %v631_v0 }
  0x37   :  { %476 = vmatpush3.bf16.msra.mxu0 %v538_v7  ;;  %496 = vmatpush3.bf16.msra.mxu1 %v546_v14 }
  0x38   :  { %477 = vmatprep.subr.bf16.mxu0 %v631_v0  ;;  %497 = vmatprep.subr.bf16.mxu1 %v631_v0 }
  0x3b   :  { %478 = vmatpush3.bf16.msra.mxu0 %v539_v9  ;;  %498 = vmatpush3.bf16.msra.mxu1 %v547_v15 }
  0x3c   :  { %479 = vmatprep.subr.bf16.mxu0 %v631_v0  ;;  %499 = vmatprep.subr.bf16.mxu1 %v631_v0 }
  0x3f   :  { %480 = vmatpush3.bf16.msra.mxu0 %v540_v10  ;;  %500 = vmatpush3.bf16.msra.mxu1 %v548_v16 }
  0x40   :  { %481 = vmatprep.subr.bf16.mxu0 %v631_v0  ;;  %501 = vmatprep.subr.bf16.mxu1 %v631_v0 }
  0x43   :  { %482 = vmatpush3.bf16.msra.mxu0 %v541_v11  ;;  %502 = vmatpush3.bf16.msra.mxu1 %v549_v17 }
  0x44   :  { %507 = vmatprep.subr.bf16.mxu0 %v631_v0 }
  0x46   :  { %484 = vmatmul.mubr.bf16.vlgmr.msra.gmra.mxu0 %v68_v12 }
  0x47   :  { %523 = vmatprep.mubr.msk.bf16.mxu0 %vm632_vm0, %v631_v0  ;;  %508 = vmatpush3.bf16.msra.mxu0 %v550_v18 }
  0x48   :  { %509 = vmatprep.subr.bf16.mxu0 %v631_v0 }
  0x4b   :  { %510 = vmatpush3.bf16.msra.mxu0 %v551_v19 }
  0x4c   :  { %511 = vmatprep.subr.bf16.mxu0 %v631_v0 }
  0x4f   :  { %512 = vmatpush3.bf16.msra.mxu0 %v552_v20 }
  0x50   :  { %513 = vmatprep.subr.bf16.mxu0 %v631_v0 }
  0x53   :  { %514 = vmatpush3.bf16.msra.mxu0 %v553_v29 }
  0x54   :  { %515 = vmatprep.subr.bf16.mxu0 %v631_v0 }
  0x57   :  { %516 = vmatpush3.bf16.msra.mxu0 %v554_v30 }
  0x58   :  { %517 = vmatprep.subr.bf16.mxu0 %v631_v0 }
  0x5b   :  { %518 = vmatpush3.bf16.msra.mxu0 %v555_v31 }
  0x5c   :  { %519 = vmatprep.subr.bf16.mxu0 %v631_v0 }
  0x5f   :  { %520 = vmatpush3.bf16.msra.mxu0 %v556_v32 }
  0x60   :  { %521 = vmatprep.subr.bf16.mxu0 %v631_v0 }
  0x63   :  { %522 = vmatpush3.bf16.msra.mxu0 %v557_v33 }
 0x106   :  { %v174_v22 = vpop.f32.mrf.mxu0 }
 0x107   :  { %v175_v23 = vadd.f32 %v413_v21, %v174_v22 }
 0x108   :  { %v485_v24 = vpop.f32.mrf.mxu0 }
 0x109   :  { %558 = vtanh.f32 %v175_v23 }
 0x10a   :  { %v177_v25 = vpop.f32.mrf.mxu0 }
 0x10c   :  { %v486_v26 = vpop.f32.mrf.mxu0 }
 0x116   :  { %v559_v27 = vpop.eup %558 }
 0x117   :  { %v181_v28 = vpack.c.bf16 %v559_v27, %v559_v27 }
 0x119   :  { %504 = vmatmul.mubr.bf16.vlgmr.msra.gmra.mxu1 %v181_v28 }
 0x1d9   :  { %v287_v35 = vpop.f32.mrf.mxu1 }
 0x1da   :  { %v288_v36 = vadd.f32 %v422_v34, %v287_v35 }
 0x1db   :  { %v505_v37 = vpop.f32.mrf.mxu1 }
 0x1dc   :  { %560 = vtanh.f32 %v288_v36 }
 0x1dd   :  { %v290_v38 = vpop.f32.mrf.mxu1 }
 0x1df   :  { %v506_v39 = vpop.f32.mrf.mxu1 }
 0x1e9   :  { %v561_v40 = vpop.eup %560 }
 0x1ea   :  { %v294_v41 = vpack.c.bf16 %v561_v40, %v561_v40 }
 0x1ec   :  { %524 = vmatmul.mubr.bf16.vlgmr.msra.gmra.mxu0 %v294_v41 }
 0x2ac   :  { %v400_v43 = vpop.f32.mrf.mxu0 }
 0x2ad   :  { %v401_v44 = vadd.f32 %v431_v42, %v400_v43 }
 0x2ae   :  { %v525_v45 = vpop.f32.mrf.mxu0 }
 0x2af   :  { %406 = vst [vmem:[%s734_s7] sm:$0xff] %v401_v44 }
 0x2b0   :  { %v403_v46 = vpop.f32.mrf.mxu0 }
 0x2b2   :  { %v526_v47 = vpop.f32.mrf.mxu0 }
 0x2b3   :  { %411 = vsyncpa [#allocation3], 1 }
 0x2b4   :  { %412 = vsyncpa [#allocation5], 1 }

</bundles_post_ra>
